<compile_context>
chip_gen: v7x
topology: tpu7x:2x2x1
jax: 0.10.0
libtpu: 0.0.40
codegen_flags: <defaults>
</compile_context>

<pallas_src>
import functools

import jax
import jax.numpy as jnp
from jax.experimental import pallas as pl
from jax.experimental.pallas import tpu as pltpu

LANE = 128
SUBLANE = 8
MAX_BLOCK_ROWS = 4096        # (4096,128) f32 = 2 MiB per input per buffer
CHUNK_ROWS_TARGET = 512      # in-kernel accumulation chunk (bounds intermediates)


def _row_align(*dtypes):
    """Sublane alignment required by the narrowest streamed dtype."""
    a = SUBLANE
    for dt in dtypes:
        size = jnp.dtype(dt).itemsize
        if size == 2:
            a = max(a, 16)
        elif size == 1:
            a = max(a, 32)
    return a


def _pick_chunk_rows(block_rows, align, target=CHUNK_ROWS_TARGET):
    """Largest chunk <= target that divides block_rows and respects alignment."""
    c = min(target, block_rows)
    c -= c % align
    c = max(c, align)
    while block_rows % c:
        c -= align
    return c


def _dice_bce_kernel(x_ref, t_ref, o_ref, *, n_valid, block_rows, chunk_rows,
                     blocks_total, full_blocks, bps):
    p = pl.program_id(0)       # parallel split (dual-TC on v7x)
    j = pl.program_id(1)       # reduction step within the split

    @pl.when(j == 0)
    def _init():
        o_ref[...] = jnp.zeros_like(o_ref)

    blk = p * bps + j          # logical block id (may exceed blocks_total)
    n_chunks = block_rows // chunk_rows
    k = chunk_rows // SUBLANE

    def accumulate(tail):
        """tail=None: fully-valid fast path; else #valid elements in block."""

        def chunk_body(i, carry):
            acc_bce, acc_st, acc_inter = carry
            r0 = pl.multiple_of(i * chunk_rows, chunk_rows)
            x = x_ref[pl.ds(r0, chunk_rows), :].astype(jnp.float32)
            t = t_ref[pl.ds(r0, chunk_rows), :].astype(jnp.float32)

            if tail is not None:
                rr = jax.lax.broadcasted_iota(jnp.int32, (chunk_rows, LANE), 0)
                cc = jax.lax.broadcasted_iota(jnp.int32, (chunk_rows, LANE), 1)
                # Block-relative index (< block_rows*128) vs. remaining count:
                # stays far from int32 overflow.
                valid = (r0 + rr) * LANE + cc < tail
                # Zero garbage lanes before any transcendental (where is a
                # select, so stale NaN/Inf cannot propagate).
                x = jnp.where(valid, x, 0.0)
                t = jnp.where(valid, t, 0.0)

            # Shared transcendental work:
            #   BCE     = max(x,0) - x*t + log1p(exp(-|x|))
            #   sigmoid = 1/(1+e) if x>=0 else e/(1+e), with e = exp(-|x|)
            e = jnp.exp(-jnp.abs(x))
            bce = jnp.maximum(x, 0.0) - x * t + jnp.log1p(e)
            inv = pl.reciprocal(1.0 + e, approx=True)
            inv = inv * (2.0 - (1.0 + e) * inv)        # one Newton step
            sig = jnp.where(x >= 0.0, inv, e * inv)

            if tail is not None:
                m = valid.astype(jnp.float32)
                bce = bce * m                          # x=t=0 lanes give log(2), 0.5
                sig = sig * m

            # (chunk_rows,128) -> (8,128): layout-preserving reshape + VPU adds.
            acc_bce = acc_bce + bce.reshape(k, SUBLANE, LANE).sum(axis=0)
            acc_st = acc_st + (sig + t).reshape(k, SUBLANE, LANE).sum(axis=0)
            acc_inter = acc_inter + (sig * t).reshape(k, SUBLANE, LANE).sum(axis=0)
            return acc_bce, acc_st, acc_inter

        zeros = jnp.zeros((SUBLANE, LANE), jnp.float32)
        acc_bce, acc_st, acc_inter = jax.lax.fori_loop(
            0, n_chunks, chunk_body, (zeros, zeros, zeros))

        o_ref[0, 0] = o_ref[0, 0] + acc_bce
        o_ref[0, 1] = o_ref[0, 1] + acc_st
        o_ref[0, 2] = o_ref[0, 2] + acc_inter

    @pl.when(blk < full_blocks)
    def _fast():                       # interior block: no mask machinery at all
        accumulate(None)

    @pl.when(blk >= full_blocks)
    def _slow():                       # ragged tail or clamped duplicate block
        row0 = jnp.minimum(blk, blocks_total - 1) * block_rows
        tail = jnp.where(blk < blocks_total,
                         jnp.int32(n_valid) - row0 * LANE,
                         jnp.int32(0))
        accumulate(tail)


def dice_bce_loss(inputs, targets, smooth=1.0):
    """Pallas implementation of DiceBCELoss.forward."""
    # Match the PyTorch module's shape handling.
    if inputs.ndim == 3 and inputs.shape[1] == 1:
        inputs = jnp.squeeze(inputs, axis=1)
    if targets.shape != inputs.shape:
        targets = targets.reshape(inputs.shape)

    if not jnp.issubdtype(inputs.dtype, jnp.floating):
        inputs = inputs.astype(jnp.float32)
    if not jnp.issubdtype(targets.dtype, jnp.floating):
        # {0,1} labels are exact in bf16: stream 2 B/elem instead of 4.
        # Float targets are streamed at their native width (no wrapper astype).
        targets = targets.astype(jnp.bfloat16)

    x = inputs.reshape(-1)
    t = targets.reshape(-1)
    n = x.shape[0]
    if n >= 2 ** 31:
        # TODO(synk): 32-bit in-kernel index math; chunk the call for >= 2^31 elems.
        raise NotImplementedError("dice_bce_loss supports < 2**31 elements")

    align = _row_align(x.dtype, t.dtype)
    min_tile = align * LANE
    n_pad = ((n + min_tile - 1) // min_tile) * min_tile
    if n_pad != n:
        # TODO(synk): ragged sizes take one pad copy; typical NCHW sizes never pad.
        x = jnp.pad(x, (0, n_pad - n))
        t = jnp.pad(t, (0, n_pad - n))

    rows = n_pad // LANE                      # multiple of `align`
    block_rows = min(MAX_BLOCK_ROWS, rows)
    chunk_rows = _pick_chunk_rows(block_rows, align)
    blocks_total = pl.cdiv(rows, block_rows)
    full_blocks = n // (block_rows * LANE)    # blocks needing no masking

    # TODO(synk): derive the split from the TensorCore count (2 on v7x) once a
    # stable query exists; SPLIT=2 is harmless on 1-TC parts (at most one
    # fully-masked duplicate block when blocks_total is odd).
    split = 2 if blocks_total > 1 else 1
    bps = pl.cdiv(blocks_total, split)        # blocks per parallel split

    x2 = x.reshape(rows, LANE)
    t2 = t.reshape(rows, LANE)

    kernel = functools.partial(
        _dice_bce_kernel,
        n_valid=n, block_rows=block_rows, chunk_rows=chunk_rows,
        blocks_total=blocks_total, full_blocks=full_blocks, bps=bps)

    def in_map(p, j):
        # Clamp so the DMA window never starts past the array; the kernel
        # masks out the duplicated block (tail = 0).
        return (jnp.minimum(p * bps + j, blocks_total - 1), 0)

    partials = pl.pallas_call(
        kernel,
        out_shape=jax.ShapeDtypeStruct((split, 3, SUBLANE, LANE), jnp.float32),
        grid_spec=pltpu.PrefetchScalarGridSpec(
            num_scalar_prefetch=0,
            grid=(split, bps),
            in_specs=[
                pl.BlockSpec((block_rows, LANE), in_map),
                pl.BlockSpec((block_rows, LANE), in_map),
            ],
            out_specs=pl.BlockSpec((1, 3, SUBLANE, LANE),
                                   lambda p, j: (p, 0, 0, 0)),
        ),
        compiler_params=pltpu.CompilerParams(
            dimension_semantics=("parallel", "arbitrary"),
            vmem_limit_bytes=32 * 1024 * 1024,
        ),
    )(x2, t2)

    # Tiny finalize in plain JAX: [sum(bce), sum(sig)+sum(t), sum(sig*t)].
    sums = jnp.sum(partials, axis=(0, 2, 3))
    smooth = jnp.float32(smooth)
    bce_mean = sums[0] / jnp.float32(n)
    dice_loss = 1.0 - (2.0 * sums[2] + smooth) / (sums[1] + smooth)
    return bce_mean + dice_loss


def _reference_loss(inputs, targets, smooth=1.0):
    """Pure-JAX reference matching the PyTorch module."""
    x = inputs.astype(jnp.float32)
    t = targets.astype(jnp.float32).reshape(x.shape)
    bce = jnp.mean(
        jnp.maximum(x, 0.0) - x * t + jnp.log1p(jnp.exp(-jnp.abs(x)))
    )
    s = jax.nn.sigmoid(x)
    inter = jnp.sum(s * t)
    dice = 1.0 - (2.0 * inter + smooth) / (jnp.sum(s) + jnp.sum(t) + smooth)
    return bce + dice


if __name__ == "__main__":
    key = jax.random.PRNGKey(0)

    cases = [
        ((2, 4, 16, 16), 1e-5),     # primary small case: single full block
        ((3, 1, 17, 19), 1e-5),     # ragged size: pad copy + masked tail path
        ((3, 8, 256, 256), 1e-4),   # multi-block: split=2, clamped duplicate block
    ]
    for i, (shape, tol) in enumerate(cases):
        k1, k2 = jax.random.split(jax.random.fold_in(key, i))
        logits = jax.random.normal(k1, shape, dtype=jnp.float32)
        targets = jax.random.bernoulli(k2, p=0.5, shape=shape).astype(jnp.float32)

        loss = jax.block_until_ready(dice_bce_loss(logits, targets, smooth=1.0))
        ref = _reference_loss(logits, targets, smooth=1.0)
        assert jnp.allclose(loss, ref, rtol=tol, atol=tol), (shape, loss, ref)

    print("KERNEL_OK")
</pallas_src>

<mosaic_0001>
module attributes {stable_mosaic.version = 11 : i64} {
  func.func @_dice_bce_kernel(%arg0: i32, %arg1: i32, %arg2: memref<16x128xf32, #tpu.memory_space<vmem>>, %arg3: memref<16x128xf32, #tpu.memory_space<vmem>>, %arg4: memref<1x3x8x128xf32, #tpu.memory_space<vmem>>) attributes {dimension_semantics = [#tpu.dimension_semantics<parallel>, #tpu.dimension_semantics<arbitrary>], iteration_bounds = array<i64: 1, 1>, scalar_prefetch = 0 : i64, scratch_operands = 0 : i64, tpu.core_type = #tpu.core_type<tc>, window_params = [{transform_indices = @transform_0, window_bounds = array<i64: 16, 128>}, {transform_indices = @transform_1, window_bounds = array<i64: 16, 128>}, {transform_indices = @transform_2, window_bounds = array<i64: 1, 3, 8, 128>}]} {
    %c0_i32 = arith.constant 0 : i32
    %0 = arith.cmpi eq, %arg1, %c0_i32 : i32
    %1 = arith.extui %0 : i1 to i32
    %c0_i32_0 = arith.constant 0 : i32
    %2 = arith.cmpi ne, %1, %c0_i32_0 : i32
    scf.if %2 {
      %cst = arith.constant 0.000000e+00 : f32
      %11 = vector.broadcast %cst : f32 to vector<1x3x8x128xf32>
      %c0 = arith.constant 0 : index
      %c0_5 = arith.constant 0 : index
      %c0_6 = arith.constant 0 : index
      %c0_7 = arith.constant 0 : index
      %12 = vector.load %arg4[%c0, %c0_5, %c0_6, %c0_7] : memref<1x3x8x128xf32, #tpu.memory_space<vmem>>, vector<1x3x8x128xf32>
      tpu.vector_store %arg4[%c0, %c0_5, %c0_6, %c0_7], %11 {strides = array<i32>} : memref<1x3x8x128xf32, #tpu.memory_space<vmem>>, vector<1x3x8x128xf32>,
    } else {
    }
    %c1_i32 = arith.constant 1 : i32
    %3 = arith.muli %arg0, %c1_i32 : i32
    %4 = arith.addi %3, %arg1 : i32
    %c1_i32_1 = arith.constant 1 : i32
    %5 = arith.cmpi slt, %4, %c1_i32_1 : i32
    %6 = arith.extui %5 : i1 to i32
    %c0_i32_2 = arith.constant 0 : i32
    %7 = arith.cmpi ne, %6, %c0_i32_2 : i32
    scf.if %7 {
      %cst = arith.constant 0.000000e+00 : f32
      %11 = vector.broadcast %cst : f32 to vector<8x128xf32>
      %c0_i32_5 = arith.constant 0 : i32
      %c16_i32 = arith.constant 16 : i32
      %12 = arith.muli %c0_i32_5, %c16_i32 : i32
      %13 = tpu.assume_multiple %12, 16 : i32
      %14 = arith.index_cast %13 : i32 to index
      %c0 = arith.constant 0 : index
      %15 = vector.load %arg2[%14, %c0] : memref<16x128xf32, #tpu.memory_space<vmem>>, vector<16x128xf32>
      %16 = arith.index_cast %13 : i32 to index
      %c0_6 = arith.constant 0 : index
      %17 = vector.load %arg3[%16, %c0_6] : memref<16x128xf32, #tpu.memory_space<vmem>>, vector<16x128xf32>
      %18 = math.absf %15 : vector<16x128xf32>
      %cst_7 = arith.constant 0.000000e+00 : f32
      %19 = vector.broadcast %cst_7 : f32 to vector<16x128xf32>
      %20 = arith.subf %19, %18 : vector<16x128xf32>
      %21 = math.exp %20 : vector<16x128xf32>
      %cst_8 = arith.constant 0.000000e+00 : f32
      %22 = vector.broadcast %cst_8 : f32 to vector<16x128xf32>
      %23 = arith.maximumf %15, %22 : vector<16x128xf32>
      %24 = arith.mulf %15, %17 : vector<16x128xf32>
      %25 = arith.subf %23, %24 : vector<16x128xf32>
      %26 = math.log1p %21 : vector<16x128xf32>
      %27 = arith.addf %25, %26 : vector<16x128xf32>
      %cst_9 = arith.constant 1.000000e+00 : f32
      %28 = vector.broadcast %cst_9 : f32 to vector<16x128xf32>
      %29 = arith.addf %28, %21 : vector<16x128xf32>
      %30 = tpu.reciprocal %29 {approx = true} : vector<16x128xf32> -> vector<16x128xf32>
      %cst_10 = arith.constant 1.000000e+00 : f32
      %31 = vector.broadcast %cst_10 : f32 to vector<16x128xf32>
      %32 = arith.addf %31, %21 : vector<16x128xf32>
      %33 = arith.mulf %32, %30 : vector<16x128xf32>
      %cst_11 = arith.constant 2.000000e+00 : f32
      %34 = vector.broadcast %cst_11 : f32 to vector<16x128xf32>
      %35 = arith.subf %34, %33 : vector<16x128xf32>
      %36 = arith.mulf %30, %35 : vector<16x128xf32>
      %cst_12 = arith.constant 0.000000e+00 : f32
      %37 = vector.broadcast %cst_12 : f32 to vector<16x128xf32>
      %38 = arith.cmpf oge, %15, %37 : vector<16x128xf32>
      %39 = arith.mulf %21, %36 : vector<16x128xf32>
      %40 = arith.select %38, %36, %39 : vector<16x128xi1>, vector<16x128xf32>
      %41 = vector.shape_cast %27 : vector<16x128xf32> to vector<2x8x128xf32>
      %cst_13 = arith.constant dense<0.000000e+00> : vector<8x128xf32>
      %42 = vector.multi_reduction <add>, %41, %cst_13 [0] : vector<2x8x128xf32> to vector<8x128xf32>
      %43 = arith.addf %11, %42 : vector<8x128xf32>
      %44 = arith.addf %40, %17 : vector<16x128xf32>
      %45 = vector.shape_cast %44 : vector<16x128xf32> to vector<2x8x128xf32>
      %cst_14 = arith.constant dense<0.000000e+00> : vector<8x128xf32>
      %46 = vector.multi_reduction <add>, %45, %cst_14 [0] : vector<2x8x128xf32> to vector<8x128xf32>
      %47 = arith.addf %11, %46 : vector<8x128xf32>
      %48 = arith.mulf %40, %17 : vector<16x128xf32>
      %49 = vector.shape_cast %48 : vector<16x128xf32> to vector<2x8x128xf32>
      %cst_15 = arith.constant dense<0.000000e+00> : vector<8x128xf32>
      %50 = vector.multi_reduction <add>, %49, %cst_15 [0] : vector<2x8x128xf32> to vector<8x128xf32>
      %51 = arith.addf %11, %50 : vector<8x128xf32>
      %c1_i32_16 = arith.constant 1 : i32
      %c0_17 = arith.constant 0 : index
      %c0_18 = arith.constant 0 : index
      %c0_19 = arith.constant 0 : index
      %c0_20 = arith.constant 0 : index
      %52 = vector.load %arg4[%c0_17, %c0_18, %c0_19, %c0_20] : memref<1x3x8x128xf32, #tpu.memory_space<vmem>>, vector<1x1x8x128xf32>
      %53 = vector.shape_cast %52 : vector<1x1x8x128xf32> to vector<8x128xf32>
      %54 = arith.addf %53, %43 : vector<8x128xf32>
      %c0_21 = arith.constant 0 : index
      %c0_22 = arith.constant 0 : index
      %c0_23 = arith.constant 0 : index
      %c0_24 = arith.constant 0 : index
      %55 = vector.load %arg4[%c0_21, %c0_22, %c0_23, %c0_24] : memref<1x3x8x128xf32, #tpu.memory_space<vmem>>, vector<1x1x8x128xf32>
      %56 = vector.shape_cast %55 : vector<1x1x8x128xf32> to vector<8x128xf32>
      %57 = vector.shape_cast %54 : vector<8x128xf32> to vector<1x1x8x128xf32>
      tpu.vector_store %arg4[%c0_21, %c0_22, %c0_23, %c0_24], %57 {strides = array<i32>} : memref<1x3x8x128xf32, #tpu.memory_space<vmem>>, vector<1x1x8x128xf32>,
      %c0_25 = arith.constant 0 : index
      %c1 = arith.constant 1 : index
      %c0_26 = arith.constant 0 : index
      %c0_27 = arith.constant 0 : index
      %58 = vector.load %arg4[%c0_25, %c1, %c0_26, %c0_27] : memref<1x3x8x128xf32, #tpu.memory_space<vmem>>, vector<1x1x8x128xf32>
      %59 = vector.shape_cast %58 : vector<1x1x8x128xf32> to vector<8x128xf32>
      %60 = arith.addf %59, %47 : vector<8x128xf32>
      %c0_28 = arith.constant 0 : index
      %c1_29 = arith.constant 1 : index
      %c0_30 = arith.constant 0 : index
      %c0_31 = arith.constant 0 : index
      %61 = vector.load %arg4[%c0_28, %c1_29, %c0_30, %c0_31] : memref<1x3x8x128xf32, #tpu.memory_space<vmem>>, vector<1x1x8x128xf32>
      %62 = vector.shape_cast %61 : vector<1x1x8x128xf32> to vector<8x128xf32>
      %63 = vector.shape_cast %60 : vector<8x128xf32> to vector<1x1x8x128xf32>
      tpu.vector_store %arg4[%c0_28, %c1_29, %c0_30, %c0_31], %63 {strides = array<i32>} : memref<1x3x8x128xf32, #tpu.memory_space<vmem>>, vector<1x1x8x128xf32>,
      %c0_32 = arith.constant 0 : index
      %c2 = arith.constant 2 : index
      %c0_33 = arith.constant 0 : index
      %c0_34 = arith.constant 0 : index
      %64 = vector.load %arg4[%c0_32, %c2, %c0_33, %c0_34] : memref<1x3x8x128xf32, #tpu.memory_space<vmem>>, vector<1x1x8x128xf32>
      %65 = vector.shape_cast %64 : vector<1x1x8x128xf32> to vector<8x128xf32>
      %66 = arith.addf %65, %51 : vector<8x128xf32>
      %c0_35 = arith.constant 0 : index
      %c2_36 = arith.constant 2 : index
      %c0_37 = arith.constant 0 : index
      %c0_38 = arith.constant 0 : index
      %67 = vector.load %arg4[%c0_35, %c2_36, %c0_37, %c0_38] : memref<1x3x8x128xf32, #tpu.memory_space<vmem>>, vector<1x1x8x128xf32>
      %68 = vector.shape_cast %67 : vector<1x1x8x128xf32> to vector<8x128xf32>
      %69 = vector.shape_cast %66 : vector<8x128xf32> to vector<1x1x8x128xf32>
      tpu.vector_store %arg4[%c0_35, %c2_36, %c0_37, %c0_38], %69 {strides = array<i32>} : memref<1x3x8x128xf32, #tpu.memory_space<vmem>>, vector<1x1x8x128xf32>,
    } else {
    }
    %c1_i32_3 = arith.constant 1 : i32
    %8 = arith.cmpi sge, %4, %c1_i32_3 : i32
    %9 = arith.extui %8 : i1 to i32
    %c0_i32_4 = arith.constant 0 : i32
    %10 = arith.cmpi ne, %9, %c0_i32_4 : i32
    scf.if %10 {
      %c0_i32_5 = arith.constant 0 : i32
      %11 = arith.minsi %4, %c0_i32_5 : i32
      %c16_i32 = arith.constant 16 : i32
      %12 = arith.muli %11, %c16_i32 : i32
      %c1_i32_6 = arith.constant 1 : i32
      %13 = arith.cmpi slt, %4, %c1_i32_6 : i32
      %c128_i32 = arith.constant 128 : i32
      %14 = arith.muli %12, %c128_i32 : i32
      %c2048_i32 = arith.constant 2048 : i32
      %15 = arith.subi %c2048_i32, %14 : i32
      %c0_i32_7 = arith.constant 0 : i32
      %16 = arith.select %13, %15, %c0_i32_7 : i32
      %cst = arith.constant 0.000000e+00 : f32
      %17 = vector.broadcast %cst : f32 to vector<8x128xf32>
      %c0_i32_8 = arith.constant 0 : i32
      %c16_i32_9 = arith.constant 16 : i32
      %18 = arith.muli %c0_i32_8, %c16_i32_9 : i32
      %19 = tpu.assume_multiple %18, 16 : i32
      %20 = arith.index_cast %19 : i32 to index
      %c0 = arith.constant 0 : index
      %21 = vector.load %arg2[%20, %c0] : memref<16x128xf32, #tpu.memory_space<vmem>>, vector<16x128xf32>
      %22 = arith.index_cast %19 : i32 to index
      %c0_10 = arith.constant 0 : index
      %23 = vector.load %arg3[%22, %c0_10] : memref<16x128xf32, #tpu.memory_space<vmem>>, vector<16x128xf32>
      %24 = tpu.iota {dimensions = array<i32: 0>} : vector<16x128xi32>
      %25 = tpu.iota {dimensions = array<i32: 1>} : vector<16x128xi32>
      %26 = vector.broadcast %19 : i32 to vector<16x128xi32>
      %27 = arith.addi %26, %24 : vector<16x128xi32>
      %c128_i32_11 = arith.constant 128 : i32
      %28 = vector.broadcast %c128_i32_11 : i32 to vector<16x128xi32>
      %29 = arith.muli %27, %28 : vector<16x128xi32>
      %30 = arith.addi %29, %25 : vector<16x128xi32>
      %31 = vector.broadcast %16 : i32 to vector<16x128xi32>
      %32 = arith.cmpi slt, %30, %31 : vector<16x128xi32>
      %cst_12 = arith.constant 0.000000e+00 : f32
      %33 = vector.broadcast %cst_12 : f32 to vector<16x128xf32>
      %34 = arith.select %32, %21, %33 : vector<16x128xi1>, vector<16x128xf32>
      %cst_13 = arith.constant 0.000000e+00 : f32
      %35 = vector.broadcast %cst_13 : f32 to vector<16x128xf32>
      %36 = arith.select %32, %23, %35 : vector<16x128xi1>, vector<16x128xf32>
      %37 = math.absf %34 : vector<16x128xf32>
      %cst_14 = arith.constant 0.000000e+00 : f32
      %38 = vector.broadcast %cst_14 : f32 to vector<16x128xf32>
      %39 = arith.subf %38, %37 : vector<16x128xf32>
      %40 = math.exp %39 : vector<16x128xf32>
      %cst_15 = arith.constant 0.000000e+00 : f32
      %41 = vector.broadcast %cst_15 : f32 to vector<16x128xf32>
      %42 = arith.maximumf %34, %41 : vector<16x128xf32>
      %43 = arith.mulf %34, %36 : vector<16x128xf32>
      %44 = arith.subf %42, %43 : vector<16x128xf32>
      %45 = math.log1p %40 : vector<16x128xf32>
      %46 = arith.addf %44, %45 : vector<16x128xf32>
      %cst_16 = arith.constant 1.000000e+00 : f32
      %47 = vector.broadcast %cst_16 : f32 to vector<16x128xf32>
      %48 = arith.addf %47, %40 : vector<16x128xf32>
      %49 = tpu.reciprocal %48 {approx = true} : vector<16x128xf32> -> vector<16x128xf32>
      %cst_17 = arith.constant 1.000000e+00 : f32
      %50 = vector.broadcast %cst_17 : f32 to vector<16x128xf32>
      %51 = arith.addf %50, %40 : vector<16x128xf32>
      %52 = arith.mulf %51, %49 : vector<16x128xf32>
      %cst_18 = arith.constant 2.000000e+00 : f32
      %53 = vector.broadcast %cst_18 : f32 to vector<16x128xf32>
      %54 = arith.subf %53, %52 : vector<16x128xf32>
      %55 = arith.mulf %49, %54 : vector<16x128xf32>
      %cst_19 = arith.constant 0.000000e+00 : f32
      %56 = vector.broadcast %cst_19 : f32 to vector<16x128xf32>
      %57 = arith.cmpf oge, %34, %56 : vector<16x128xf32>
      %58 = arith.mulf %40, %55 : vector<16x128xf32>
      %59 = arith.select %57, %55, %58 : vector<16x128xi1>, vector<16x128xf32>
      %60 = arith.extui %32 : vector<16x128xi1> to vector<16x128xi32>
      %61 = arith.sitofp %60 : vector<16x128xi32> to vector<16x128xf32>
      %62 = arith.mulf %46, %61 : vector<16x128xf32>
      %63 = arith.mulf %59, %61 : vector<16x128xf32>
      %64 = vector.shape_cast %62 : vector<16x128xf32> to vector<2x8x128xf32>
      %cst_20 = arith.constant dense<0.000000e+00> : vector<8x128xf32>
      %65 = vector.multi_reduction <add>, %64, %cst_20 [0] : vector<2x8x128xf32> to vector<8x128xf32>
      %66 = arith.addf %17, %65 : vector<8x128xf32>
      %67 = arith.addf %63, %36 : vector<16x128xf32>
      %68 = vector.shape_cast %67 : vector<16x128xf32> to vector<2x8x128xf32>
      %cst_21 = arith.constant dense<0.000000e+00> : vector<8x128xf32>
      %69 = vector.multi_reduction <add>, %68, %cst_21 [0] : vector<2x8x128xf32> to vector<8x128xf32>
      %70 = arith.addf %17, %69 : vector<8x128xf32>
      %71 = arith.mulf %63, %36 : vector<16x128xf32>
      %72 = vector.shape_cast %71 : vector<16x128xf32> to vector<2x8x128xf32>
      %cst_22 = arith.constant dense<0.000000e+00> : vector<8x128xf32>
      %73 = vector.multi_reduction <add>, %72, %cst_22 [0] : vector<2x8x128xf32> to vector<8x128xf32>
      %74 = arith.addf %17, %73 : vector<8x128xf32>
      %c1_i32_23 = arith.constant 1 : i32
      %c0_24 = arith.constant 0 : index
      %c0_25 = arith.constant 0 : index
      %c0_26 = arith.constant 0 : index
      %c0_27 = arith.constant 0 : index
      %75 = vector.load %arg4[%c0_24, %c0_25, %c0_26, %c0_27] : memref<1x3x8x128xf32, #tpu.memory_space<vmem>>, vector<1x1x8x128xf32>
      %76 = vector.shape_cast %75 : vector<1x1x8x128xf32> to vector<8x128xf32>
      %77 = arith.addf %76, %66 : vector<8x128xf32>
      %c0_28 = arith.constant 0 : index
      %c0_29 = arith.constant 0 : index
      %c0_30 = arith.constant 0 : index
      %c0_31 = arith.constant 0 : index
      %78 = vector.load %arg4[%c0_28, %c0_29, %c0_30, %c0_31] : memref<1x3x8x128xf32, #tpu.memory_space<vmem>>, vector<1x1x8x128xf32>
      %79 = vector.shape_cast %78 : vector<1x1x8x128xf32> to vector<8x128xf32>
      %80 = vector.shape_cast %77 : vector<8x128xf32> to vector<1x1x8x128xf32>
      tpu.vector_store %arg4[%c0_28, %c0_29, %c0_30, %c0_31], %80 {strides = array<i32>} : memref<1x3x8x128xf32, #tpu.memory_space<vmem>>, vector<1x1x8x128xf32>,
      %c0_32 = arith.constant 0 : index
      %c1 = arith.constant 1 : index
      %c0_33 = arith.constant 0 : index
      %c0_34 = arith.constant 0 : index
      %81 = vector.load %arg4[%c0_32, %c1, %c0_33, %c0_34] : memref<1x3x8x128xf32, #tpu.memory_space<vmem>>, vector<1x1x8x128xf32>
      %82 = vector.shape_cast %81 : vector<1x1x8x128xf32> to vector<8x128xf32>
      %83 = arith.addf %82, %70 : vector<8x128xf32>
      %c0_35 = arith.constant 0 : index
      %c1_36 = arith.constant 1 : index
      %c0_37 = arith.constant 0 : index
      %c0_38 = arith.constant 0 : index
      %84 = vector.load %arg4[%c0_35, %c1_36, %c0_37, %c0_38] : memref<1x3x8x128xf32, #tpu.memory_space<vmem>>, vector<1x1x8x128xf32>
      %85 = vector.shape_cast %84 : vector<1x1x8x128xf32> to vector<8x128xf32>
      %86 = vector.shape_cast %83 : vector<8x128xf32> to vector<1x1x8x128xf32>
      tpu.vector_store %arg4[%c0_35, %c1_36, %c0_37, %c0_38], %86 {strides = array<i32>} : memref<1x3x8x128xf32, #tpu.memory_space<vmem>>, vector<1x1x8x128xf32>,
      %c0_39 = arith.constant 0 : index
      %c2 = arith.constant 2 : index
      %c0_40 = arith.constant 0 : index
      %c0_41 = arith.constant 0 : index
      %87 = vector.load %arg4[%c0_39, %c2, %c0_40, %c0_41] : memref<1x3x8x128xf32, #tpu.memory_space<vmem>>, vector<1x1x8x128xf32>
      %88 = vector.shape_cast %87 : vector<1x1x8x128xf32> to vector<8x128xf32>
      %89 = arith.addf %88, %74 : vector<8x128xf32>
      %c0_42 = arith.constant 0 : index
      %c2_43 = arith.constant 2 : index
      %c0_44 = arith.constant 0 : index
      %c0_45 = arith.constant 0 : index
      %90 = vector.load %arg4[%c0_42, %c2_43, %c0_44, %c0_45] : memref<1x3x8x128xf32, #tpu.memory_space<vmem>>, vector<1x1x8x128xf32>
      %91 = vector.shape_cast %90 : vector<1x1x8x128xf32> to vector<8x128xf32>
      %92 = vector.shape_cast %89 : vector<8x128xf32> to vector<1x1x8x128xf32>
      tpu.vector_store %arg4[%c0_42, %c2_43, %c0_44, %c0_45], %92 {strides = array<i32>} : memref<1x3x8x128xf32, #tpu.memory_space<vmem>>, vector<1x1x8x128xf32>,
    } else {
    }
    return
  }
  func.func @transform_0(%arg0: i32, %arg1: i32) -> (i32, i32) {
    %c1_i32 = arith.constant 1 : i32
    %0 = arith.muli %arg0, %c1_i32 : i32
    %1 = arith.addi %0, %arg1 : i32
    %c0_i32 = arith.constant 0 : i32
    %2 = arith.minsi %1, %c0_i32 : i32
    %c0_i32_0 = arith.constant 0 : i32
    %c0_i32_1 = arith.constant 0 : i32
    return %2, %c0_i32_0 : i32, i32
  }
  func.func @transform_1(%arg0: i32, %arg1: i32) -> (i32, i32) {
    %c1_i32 = arith.constant 1 : i32
    %0 = arith.muli %arg0, %c1_i32 : i32
    %1 = arith.addi %0, %arg1 : i32
    %c0_i32 = arith.constant 0 : i32
    %2 = arith.minsi %1, %c0_i32 : i32
    %c0_i32_0 = arith.constant 0 : i32
    %c0_i32_1 = arith.constant 0 : i32
    return %2, %c0_i32_0 : i32, i32
  }
  func.func @transform_2(%arg0: i32, %arg1: i32) -> (i32, i32, i32, i32) {
    %c0_i32 = arith.constant 0 : i32
    %c0_i32_0 = arith.constant 0 : i32
    %c0_i32_1 = arith.constant 0 : i32
    %c0_i32_2 = arith.constant 0 : i32
    return %arg0, %c0_i32, %c0_i32_0, %c0_i32_1 : i32, i32, i32, i32
  }
}

</mosaic_0001>

<bundles_post_ra>
// kernel: tpu_custom_call.1
= control target key start
LH: loop header
LB: loop body
LE: loop exit
PB: predicated region body
PF: predicated region fallthrough
CT: control target
= control target key end

     0   :  { %7 = vsyncpa [#allocation3], 0  ;;  %s437_s0 = inlined_call_operand.hbm [shape: f32[16,128], index: 0, kind: input, shape index: {}]   ;;  %s438_s1 = inlined_call_operand.hbm [shape: f32[16,128], index: 1, kind: input, shape index: {}]   ;;  %s439_s2 = inlined_call_operand.hbm [shape: f32[1,3,8,128], index: 2, kind: output, shape index: {}]  }
   0x1   :  { %8 = vsyncpa [#allocation6], 0 }
   0x2   :  { %9 = vsyncpa [#allocation4], 0  ;;  %s372_s9 = smov [#allocation2]   ;;  %s300_s13 = scalar_lea.hbm %s437_s0, 256 }
   0x3   :  { %s21_s10 = sshll.u32 %s372_s9, 4  ;;  %p301_p0 = scmp.ne.s32.totalorder %s437_s0, %s300_s13  ;;  %s22_s10 = int_to_ptr.vmem [resolvable:$true] %s21_s10 }
   0x4   :  { %p304_p1 = scmp.lt.u32.totalorder %s300_s13, %s437_s0 }
   0x6   :  { %p306_p2 = pnand %p304_p1, %p301_p0 }
   0x8   :  { %309 = shalt.err (!%p306_p2)
}
   0x9   :  { %s310_s18 = scalar_lea.vmem %s22_s10, 256  ;;  %p315_p4 = scmp.lt.s32.totalorder %s22_s10, %s22_s10 }
   0xa   :  { %p311_p3 = scmp.ne.s32.totalorder %s22_s10, %s310_s18  ;;  %p316_p5 = scmp.lt.s32.totalorder %s310_s18, %s310_s18 }
   0xc   :  { %p317_p6 = por %p316_p5, %p315_p4 }
   0xe   :  { %p318_p7 = pnand %p317_p6, %p311_p3 }
  0x10   :  { %321 = shalt.err (!%p318_p7)
}
  0x11   :  { %s373_s19 = smov 128   ;;  %s374_s20 = smov 8  }
  0x12   :  { %27 = dma.hbm_to_vmem [thread:$0]  %s437_s0, 256, %s22_s10, [#allocation3], %s373_s19, %s373_s19, %s374_s20  }
  0x13   :  { %s375_s23 = smov [#allocation5]   ;;  %s322_s27 = scalar_lea.hbm %s438_s1, 256 }
  0x14   :  { %s39_s24 = sshll.u32 %s375_s23, 4  ;;  %p323_p8 = scmp.ne.s32.totalorder %s438_s1, %s322_s27  ;;  %s40_s24 = int_to_ptr.vmem [resolvable:$true] %s39_s24 }
  0x15   :  { %p326_p9 = scmp.lt.u32.totalorder %s322_s27, %s438_s1 }
  0x17   :  { %p328_p10 = pnand %p326_p9, %p323_p8 }
  0x19   :  { %331 = shalt.err (!%p328_p10)
}
  0x1a   :  { %s332_s4 = scalar_lea.vmem %s40_s24, 256  ;;  %p337_p12 = scmp.lt.s32.totalorder %s40_s24, %s40_s24 }
  0x1b   :  { %p333_p11 = scmp.ne.s32.totalorder %s40_s24, %s332_s4  ;;  %p338_p13 = scmp.lt.s32.totalorder %s332_s4, %s332_s4 }
  0x1d   :  { %p339_p0 = por %p338_p13, %p337_p12 }
  0x1f   :  { %p340_p1 = pnand %p339_p0, %p333_p11 }
  0x21   :  { %343 = shalt.err (!%p340_p1)
}
  0x22   :  { %45 = dma.hbm_to_vmem [thread:$0]  %s438_s1, 256, %s40_s24, [#allocation6], %s373_s19, %s373_s19, %s374_s20  }
  0x23   :  { %366 = dma.done.wait [#allocation3], 256  }
  0x24   :  { %367 = vsyncadd [#allocation3], 4294967040 }
  0x25   :  { %368 = dma.done.wait [#allocation6], 256  }
  0x26   :  { %369 = vsyncadd [#allocation6], 4294967040  ;;  %v72_v0 = vld [vmem:[#allocation2] sm:$0xff]  ;;  %v73_v1 = vld [vmem:[#allocation2 + $0x8] sm:$0xff]  ;;  %s376_s1 = smov [#allocation7]  }
  0x27   :  { %v76_v2 = vand.u32 2147483647, %v72_v0  ;;  %v77_v3 = vand.u32 2147483647, %v73_v1  ;;  %v74_v14 = vld [vmem:[#allocation5] sm:$0xff]  ;;  %v75_v15 = vld [vmem:[#allocation5 + $0x8] sm:$0xff] }
  0x28   :  { %v84_v17 = vmax.f32 %v72_v0, 0.0  ;;  %v86_v18 = vmul.f32 %v74_v14, %v72_v0  ;;  %v85_v21 = vmax.f32 %v73_v1, 0.0  ;;  %v87_v22 = vmul.f32 %v75_v15, %v73_v1  ;;  %s263_s6 = sshll.u32 %s376_s1, 4  ;;  %s264_s6 = int_to_ptr.vmem [resolvable:$true] %s263_s6 }
  0x29   :  { %v78_v4 = vsub.f32 0.0, %v76_v2  ;;  %v79_v5 = vsub.f32 0.0, %v77_v3  ;;  %vm120_vm2 = vcmp.ge.f32.partialorder %v72_v0, 0.0  ;;  %vm121_vm3 = vcmp.ge.f32.partialorder %v73_v1, 0.0  ;;  %s344_s7 = scalar_lea.vmem %s264_s6, 384  ;;  %p349_p3 = scmp.lt.s32.totalorder %s264_s6, %s264_s6 }
  0x2a   :  { %v88_v26 = vsub.f32 %v84_v17, %v86_v18  ;;  %v89_v29 = vsub.f32 %v85_v21, %v87_v22  ;;  %p345_p2 = scmp.ne.s32.totalorder %s264_s6, %s344_s7  ;;  %p350_p4 = scmp.lt.s32.totalorder %s344_s7, %s344_s7 }
  0x2b   :  { %v80_v6 = vmul.f32 1.442695, %v78_v4  ;;  %v82_v7 = vmul.f32 1.442695, %v79_v5 }
  0x2c   :  { %p351_p5 = por %p350_p4, %p349_p3 }
  0x2d   :  { %288 = vpow2.f32 %v80_v6 }
  0x2e   :  { %290 = vpow2.f32 %v82_v7  ;;  %p352_p6 = pnand %p351_p5, %p345_p2 }
  0x37   :  { %v289_v8 = vpop.eup %288 }
  0x38   :  { %v291_v9 = vpop.eup %290  ;;  %v90_v10 = vadd.f32 1.0, %v289_v8  ;;  %v93_v12 = vmul.f32 -0.5, %v289_v8  ;;  %v96_v19 = vand.u32 2147483647, %v289_v8 }
  0x39   :  { %v99_v11 = vadd.f32 1.0, %v291_v9  ;;  %v102_v13 = vmul.f32 -0.5, %v291_v9  ;;  %v105_v23 = vand.u32 2147483647, %v291_v9 }
  0x3a   :  { %292 = vlog2.f32 %v90_v10  ;;  %v94_v16 = vadd.f32 1.0, %v93_v12  ;;  %vm97_vm0 = vcmp.lt.f32.partialorder %v96_v19, 0.0004427343 }
  0x3b   :  { %294 = vlog2.f32 %v99_v11  ;;  %v103_v20 = vadd.f32 1.0, %v102_v13  ;;  %vm106_vm1 = vcmp.lt.f32.partialorder %v105_v23, 0.0004427343 }
  0x3c   :  { %296 = vrcp.f32 %v90_v10  ;;  %v95_v24 = vmul.f32 %v289_v8, %v94_v16 }
  0x3d   :  { %298 = vrcp.f32 %v99_v11  ;;  %v104_v27 = vmul.f32 %v291_v9, %v103_v20 }
  0x44   :  { %v293_v25 = vpop.eup %292 }
  0x45   :  { %v295_v28 = vpop.eup %294  ;;  %v92_v30 = vmul.f32 0.6931472, %v293_v25 }
  0x46   :  { %v297_v31 = vpop.eup %296  ;;  %v101_v32 = vmul.f32 0.6931472, %v295_v28 }
  0x47   :  { %v299_v33 = vpop.eup %298  ;;  %v98_v34 = vsel %vm97_vm0, %v95_v24, %v92_v30  ;;  %v114_v35 = vmul.f32 %v297_v31, %v90_v10 }
  0x48   :  { %v107_v36 = vsel %vm106_vm1, %v104_v27, %v101_v32  ;;  %v108_v37 = vadd.f32 %v98_v34, %v88_v26  ;;  %v115_v38 = vmul.f32 %v299_v33, %v99_v11 }
  0x49   :  { %v109_v39 = vadd.f32 %v107_v36, %v89_v29  ;;  %v116_v40 = vsub.f32 2.0, %v114_v35 }
  0x4a   :  { %v117_v41 = vsub.f32 2.0, %v115_v38 }
  0x4b   :  { %v126_v42 = vadd.f32 %v109_v39, %v108_v37  ;;  %v118_v43 = vmul.f32 %v297_v31, %v116_v40 }
  0x4c   :  { %v119_v44 = vmul.f32 %v299_v33, %v117_v41 }
  0x4d   :  { %v122_v45 = vmul.f32 %v289_v8, %v118_v43  ;;  %138 = vst [vmem:[#allocation7] sm:$0xff] %v126_v42 }
  0x4e   :  { %v123_v46 = vmul.f32 %v291_v9, %v119_v44 }
  0x4f   :  { %v124_v47 = vsel %vm120_vm2, %v118_v43, %v122_v45 }
  0x50   :  { %v125_v48 = vsel %vm121_vm3, %v119_v44, %v123_v46  ;;  %v128_v49 = vadd.f32 %v124_v47, %v74_v14  ;;  %v132_v50 = vmul.f32 %v124_v47, %v74_v14 }
  0x51   :  { %v129_v51 = vadd.f32 %v125_v48, %v75_v15  ;;  %v133_v52 = vmul.f32 %v125_v48, %v75_v15 }
  0x53   :  { %v130_v53 = vadd.f32 %v129_v51, %v128_v49  ;;  %v134_v54 = vadd.f32 %v133_v52, %v132_v50 }
  0x55   :  { %142 = vst [vmem:[#allocation7 + $0x8] sm:$0xff] %v130_v53  ;;  %146 = vst [vmem:[#allocation7 + $0x10] sm:$0xff] %v134_v54 }
  0x56   :  { %355 = shalt.err (!%p352_p6)
}
  0x57   :  { %s356_s10 = scalar_lea.hbm %s439_s2, 384 }
  0x58   :  { %p357_p7 = scmp.ne.s32.totalorder %s439_s2, %s356_s10  ;;  %p360_p8 = scmp.lt.u32.totalorder %s356_s10, %s439_s2 }
  0x5a   :  { %p362_p9 = pnand %p360_p8, %p357_p7 }
  0x5c   :  { %365 = shalt.err (!%p362_p9)
}
  0x5d   :  { %269 = dma.vmem_to_hbm [thread:$0]  %s264_s6, 384, %s439_s2, [#allocation4], %s373_s19, %s373_s19, %s374_s20  }
  0x5e   :  { %370 = dma.done.wait [#allocation4], 384  }
  0x5f   :  { %371 = vsyncadd [#allocation4], 4294966912 }
  0x60   :  { %273 = vsyncpa [#allocation3], 1 }
  0x61   :  { %274 = vsyncpa [#allocation6], 1 }
  0x62   :  { %275 = vsyncpa [#allocation4], 1 }

</bundles_post_ra>
